<compile_context>
chip_gen: v6e
topology: v6e:2x2x1
jax: 0.10.0
libtpu: 0.0.40
codegen_flags: <defaults>
</compile_context>

<pallas_src>
import functools

import jax
import jax.numpy as jnp
from jax.experimental import pallas as pl
from jax.experimental.pallas import tpu as pltpu


# ----------------------------- tuning knobs ---------------------------------
_RESIDENT_TABLE_BYTES = 4 * 1024 * 1024   # pin table whole in VMEM below this
_RESIDENT_MAX_VOCAB = 2048                # bounds the (tile, V) one-hot intermediate
_TOKEN_TILE_MAX = 512                     # one-hot path token tile (>=2 tiles for v7x
                                          # megacore once N >= 1024)
_GATHER_ROWS = 8                          # rows gathered per grid step (row-gather path)
_VMEM_LIMIT_BYTES = 32 * 1024 * 1024      # safe on v5e/v6e/v7x (>= v5e 16MiB default)

# Odd 31-bit mixing constants (int32-safe; integer multiplication wraps mod 2**32).
_C_BATCH = 0x61C88647
_C_CHAN = 0x1B873593
_C_SEED = 0x68E31DA5
_M1 = 0x7FEB352D
_M2 = 0x3243F6A9


def _round_up(x: int, m: int) -> int:
    return (x + m - 1) // m * m


def _logical_shr(x, s: int):
    """Logical right shift for int32 values (plain >> is arithmetic/signed)."""
    return (x >> s) & ((1 << (32 - s)) - 1)


def _uniform_hash(batch_col, chan_row, seed):
    """Deterministic per-(batch_row, channel) uniform in [0, 1), float32.

    batch_col: (T, 1) int32, chan_row: (1, D) int32, seed: scalar int32.
    Pure int32 wrap-around arithmetic -> identical on TPU / interpret mode.
    """
    x = batch_col * _C_BATCH + chan_row * _C_CHAN + seed * _C_SEED
    x = x ^ _logical_shr(x, 16)
    x = x * _M1
    x = x ^ _logical_shr(x, 15)
    x = x * _M2
    x = x ^ _logical_shr(x, 16)
    bits = _logical_shr(x, 9)                       # top 23 bits, non-negative
    return bits.astype(jnp.float32) * (1.0 / float(1 << 23))


def _apply_dropout(x, batch_col, seed, rate):
    """SpatialDropout-style mask: per (batch_row, channel), scaled by 1/(1-p)."""
    if rate <= 0.0:                                 # eval mode / p == 0: identity
        return x
    if rate >= 1.0:                                 # degenerate: drop everything
        return jnp.zeros_like(x)
    d = x.shape[-1]
    chan = jax.lax.broadcasted_iota(jnp.int32, (1, d), 1)
    u = _uniform_hash(batch_col, chan, seed)
    keep = u >= jnp.float32(rate)
    scale = jnp.float32(1.0 / (1.0 - rate))
    return x * jnp.where(keep, scale, jnp.float32(0.0))


# --------------------- path 1: VMEM-resident one-hot gather ------------------
def _onehot_kernel(seed_ref, ids_ref, batch_ref, table_ref, out_ref, *, rate, v_pad):
    """One grid step = one token tile; table is VMEM-resident (constant index).

    seed_ref : SMEM (1,)        int32
    ids_ref  : VMEM (tT, 1)     int32   token ids of this tile
    batch_ref: VMEM (tT, 1)     int32   batch-row index of each token
    table_ref: VMEM (Vp, Dp)            whole (padded) embedding table
    out_ref  : VMEM (tT, Dp)            output tile
    """
    ids_col = ids_ref[...]                                            # (tT, 1)
    v_row = jax.lax.broadcasted_iota(jnp.int32, (1, v_pad), 1)        # (1, Vp)
    # One-hot in the table dtype: bf16 tables get a single native MXU pass.
    onehot = (ids_col == v_row).astype(table_ref.dtype)               # (tT, Vp)
    # Each output element has at most one nonzero contribution, so default
    # (reduced) MXU precision is effectively exact for this gather.
    gathered = jnp.dot(onehot, table_ref[...],
                       preferred_element_type=jnp.float32)            # (tT, Dp)
    result = _apply_dropout(gathered, batch_ref[...], seed_ref[0], rate)
    out_ref[...] = result.astype(out_ref.dtype)


def _onehot_path(ids_flat, batch_flat, seed_arr, table_p, rate):
    n = ids_flat.shape[0]
    v, d_pad = table_p.shape
    v_pad = _round_up(v, 128)
    if v_pad != v:
        table_p = jnp.pad(table_p, ((0, v_pad - v), (0, 0)))

    token_tile = min(_TOKEN_TILE_MAX, _round_up(n, 8))
    n_pad = _round_up(n, token_tile)
    if n_pad != n:
        ids_flat = jnp.pad(ids_flat, (0, n_pad - n))
        batch_flat = jnp.pad(batch_flat, (0, n_pad - n))
    ids_col = ids_flat.reshape(n_pad, 1)
    batch_col = batch_flat.reshape(n_pad, 1)

    kernel = functools.partial(_onehot_kernel, rate=float(rate), v_pad=v_pad)
    return pl.pallas_call(
        kernel,
        out_shape=jax.ShapeDtypeStruct((n_pad, d_pad), table_p.dtype),
        grid_spec=pltpu.PrefetchScalarGridSpec(
            num_scalar_prefetch=1,                        # seed lives in SMEM
            grid=(n_pad // token_tile,),
            in_specs=[
                pl.BlockSpec((token_tile, 1), lambda i, s: (i, 0)),   # token ids
                pl.BlockSpec((token_tile, 1), lambda i, s: (i, 0)),   # batch rows
                pl.BlockSpec((v_pad, d_pad), lambda i, s: (0, 0)),    # resident table
            ],
            out_specs=pl.BlockSpec((token_tile, d_pad), lambda i, s: (i, 0)),
        ),
        compiler_params=pltpu.CompilerParams(
            dimension_semantics=("parallel",),
            vmem_limit_bytes=_VMEM_LIMIT_BYTES,
        ),
    )(seed_arr, ids_col, batch_col, table_p)


# --------------------- path 2: scalar-prefetch row gather --------------------
def _row_gather_kernel(ids_ref, seed_ref, batch_ref, *rest, rate, num_rows):
    """One grid step = num_rows tokens, each table row DMA'd by pl.Element spec.

    ids_ref  : SMEM (Np,)    int32   (used only by the index_maps)
    seed_ref : SMEM (1,)     int32
    batch_ref: VMEM (G, 1)   int32
    rest     : G row refs, each VMEM (1, Dp), then out_ref VMEM (G, Dp)
    """
    del ids_ref
    row_refs = rest[:num_rows]
    out_ref = rest[num_rows]
    d_pad = out_ref.shape[-1]
    gathered = jnp.concatenate(
        [r[...].reshape(1, d_pad) for r in row_refs], axis=0).astype(jnp.float32)
    result = _apply_dropout(gathered, batch_ref[...], seed_ref[0], rate)
    out_ref[...] = result.astype(out_ref.dtype)


def _row_gather_path(ids_flat, batch_flat, seed_arr, table_p, rate):
    n = ids_flat.shape[0]
    v, d_pad = table_p.shape
    g = _GATHER_ROWS
    n_pad = _round_up(n, g)
    if n_pad != n:
        ids_flat = jnp.pad(ids_flat, (0, n_pad - n))
        batch_flat = jnp.pad(batch_flat, (0, n_pad - n))
    # Clamp ids: out-of-range ids would otherwise issue OOB table-row DMAs.
    ids_flat = jnp.clip(ids_flat, 0, v - 1)
    batch_col = batch_flat.reshape(n_pad, 1)

    def row_map(i, ids, seed, *, gg):
        del seed
        return (ids[i * g + gg], 0)          # element offset (row id), block col 0

    table_specs = [
        pl.BlockSpec((pl.Element(1), d_pad), functools.partial(row_map, gg=gg))
        for gg in range(g)
    ]
    kernel = functools.partial(_row_gather_kernel, rate=float(rate), num_rows=g)
    return pl.pallas_call(
        kernel,
        out_shape=jax.ShapeDtypeStruct((n_pad, d_pad), table_p.dtype),
        grid_spec=pltpu.PrefetchScalarGridSpec(
            num_scalar_prefetch=2,            # ids + seed in SMEM
            grid=(n_pad // g,),
            in_specs=[pl.BlockSpec((g, 1), lambda i, ids, s: (i, 0))] + table_specs,
            out_specs=pl.BlockSpec((g, d_pad), lambda i, ids, s: (i, 0)),
        ),
        compiler_params=pltpu.CompilerParams(
            dimension_semantics=("parallel",),
            vmem_limit_bytes=_VMEM_LIMIT_BYTES,
        ),
    )(ids_flat, seed_arr, batch_col, *([table_p] * g))


# ------------------------------- wrapper -------------------------------------
def embedding_with_dropout(ids, table, seed, *, rate=0.2, method=None):
    """ids: (B, S) int token ids, table: (V, D) float -> (B, S, D).

    method: None/"auto" (size-based dispatch), "onehot", or "row_gather".
    """
    B, S = ids.shape
    V, D = table.shape
    N = B * S

    # Lane-dense output: pad D to a multiple of 128 and slice back afterwards.
    d_pad = _round_up(D, 128)
    table_p = table if d_pad == D else jnp.pad(table, ((0, 0), (0, d_pad - D)))

    ids_flat = ids.reshape(N).astype(jnp.int32)
    # batch row of each flattened token (kept as a tiny int column; avoids
    # relying on in-kernel integer division).
    batch_flat = jnp.arange(N, dtype=jnp.int32) // S
    seed_arr = jnp.full((1,), seed, dtype=jnp.int32)

    if method is None or method == "auto":
        table_bytes = _round_up(V, 128) * d_pad * table.dtype.itemsize
        small = (V <= _RESIDENT_MAX_VOCAB) and (table_bytes <= _RESIDENT_TABLE_BYTES)
        method = "onehot" if small else "row_gather"

    if method == "onehot":
        out_flat = _onehot_path(ids_flat, batch_flat, seed_arr, table_p, rate)
    elif method == "row_gather":
        out_flat = _row_gather_path(ids_flat, batch_flat, seed_arr, table_p, rate)
    else:
        raise ValueError(f"unknown method {method!r}")

    return out_flat[:N, :D].reshape(B, S, D)


# --------------------------------- demo ---------------------------------------
if __name__ == "__main__":
    key = jax.random.PRNGKey(0)
    k_tab, k_ids = jax.random.split(key)

    V, D = 64, 32          # vocab size, embedding dim
    B, S = 2, 8            # batch, sequence length
    rate = 0.2

    table = jax.random.normal(k_tab, (V, D), dtype=jnp.float32)
    ids = jax.random.randint(k_ids, (B, S), 0, V, dtype=jnp.int32)
    ref = table[ids]       # exact gather reference

    # 1) rate=0.0 (== PyTorch eval-mode dropout): both paths equal the gather.
    for method in ("onehot", "row_gather"):
        out_eval = jax.block_until_ready(
            embedding_with_dropout(ids, table, seed=0, rate=0.0, method=method))
        assert out_eval.shape == (B, S, D) and out_eval.dtype == jnp.float32
        # generous tolerance keeps the check robust to reduced-precision MXU modes
        assert jnp.allclose(out_eval, ref, atol=2e-2, rtol=2e-2), \
            f"gather mismatch ({method})"

    # 2) training-mode dropout: each element is either 0 (dropped channel) or
    #    the embedding value scaled by 1/(1-rate); mask is per (batch, channel).
    out_onehot = jax.block_until_ready(
        embedding_with_dropout(ids, table, seed=1234, rate=rate, method="onehot"))
    out_gather = jax.block_until_ready(
        embedding_with_dropout(ids, table, seed=1234, rate=rate, method="row_gather"))
    assert out_gather.shape == (B, S, D) and out_gather.dtype == jnp.float32
    assert jnp.allclose(out_onehot, out_gather, atol=2e-2, rtol=2e-2), \
        "one-hot and row-gather paths disagree"

    scaled = ref / (1.0 - rate)
    is_scaled = jnp.isclose(out_gather, scaled, atol=2e-2, rtol=2e-2)
    is_zero = jnp.isclose(out_gather, 0.0, atol=1e-6)
    assert bool(jnp.all(is_scaled | is_zero)), "dropout output mismatch"
    frac_dropped = float(jnp.mean(jnp.all(is_zero, axis=1).astype(jnp.float32)))
    assert 0.0 < frac_dropped < 0.7, f"implausible dropout fraction {frac_dropped}"

    # 3) auto dispatch picks the resident one-hot path at this table size.
    out_auto = jax.block_until_ready(
        embedding_with_dropout(ids, table, seed=1234, rate=rate))
    assert jnp.allclose(out_auto, out_onehot, atol=1e-6), "auto dispatch mismatch"

    print("KERNEL_OK")
</pallas_src>

<mosaic_0001>
module attributes {stable_mosaic.version = 11 : i64} {
  func.func @_onehot_kernel(%arg0: i32, %arg1: memref<1xi32, #tpu.memory_space<smem>>, %arg2: memref<16x1xi32, #tpu.memory_space<vmem>>, %arg3: memref<16x1xi32, #tpu.memory_space<vmem>>, %arg4: memref<128x128xf32, #tpu.memory_space<vmem>>, %arg5: memref<16x128xf32, #tpu.memory_space<vmem>>) attributes {dimension_semantics = [#tpu.dimension_semantics<parallel>], iteration_bounds = array<i64: 1>, scalar_prefetch = 1 : i64, scratch_operands = 0 : i64, tpu.core_type = #tpu.core_type<tc>, window_params = [{transform_indices = @transform_0, window_bounds = array<i64: 16, 1>}, {transform_indices = @transform_1, window_bounds = array<i64: 16, 1>}, {pipeline_mode = #tpu.pipeline_mode<synchronous>, transform_indices = @transform_2, window_bounds = array<i64: 128, 128>}, {transform_indices = @transform_3, window_bounds = array<i64: 16, 128>}]} {
    %c0 = arith.constant 0 : index
    %c0_0 = arith.constant 0 : index
    %0 = vector.load %arg2[%c0, %c0_0] : memref<16x1xi32, #tpu.memory_space<vmem>>, vector<16x1xi32>
    %1 = tpu.iota {dimensions = array<i32: 1>} : vector<1x128xi32>
    %2 = vector.broadcast %0 : vector<16x1xi32> to vector<16x128xi32>
    %3 = vector.broadcast %1 : vector<1x128xi32> to vector<16x128xi32>
    %4 = arith.cmpi eq, %2, %3 : vector<16x128xi32>
    %5 = arith.extui %4 : vector<16x128xi1> to vector<16x128xi32>
    %6 = arith.sitofp %5 : vector<16x128xi32> to vector<16x128xf32>
    %c0_1 = arith.constant 0 : index
    %c0_2 = arith.constant 0 : index
    %7 = vector.load %arg4[%c0_1, %c0_2] : memref<128x128xf32, #tpu.memory_space<vmem>>, vector<128x128xf32>
    %cst = arith.constant dense<0.000000e+00> : vector<16x128xf32>
    %8 = tpu.matmul %6, %7, %cst {dimension_numbers = #tpu.dot_dimension_numbers<[1], [0], [0], [1], [0, 0, 1, 1], [], []>} : vector<16x128xf32>, vector<128x128xf32>, vector<16x128xf32> -> vector<16x128xf32>
    %c0_3 = arith.constant 0 : index
    %c0_4 = arith.constant 0 : index
    %9 = vector.load %arg5[%c0_3, %c0_4] : memref<16x128xf32, #tpu.memory_space<vmem>>, vector<16x128xf32>
    tpu.vector_store %arg5[%c0_3, %c0_4], %8 {strides = array<i32>} : memref<16x128xf32, #tpu.memory_space<vmem>>, vector<16x128xf32>,
    return
  }
  func.func @transform_0(%arg0: i32, %arg1: memref<1xi32, #tpu.memory_space<smem>>) -> (i32, i32) {
    %c0_i32 = arith.constant 0 : i32
    %c0_i32_0 = arith.constant 0 : i32
    return %arg0, %c0_i32 : i32, i32
  }
  func.func @transform_1(%arg0: i32, %arg1: memref<1xi32, #tpu.memory_space<smem>>) -> (i32, i32) {
    %c0_i32 = arith.constant 0 : i32
    %c0_i32_0 = arith.constant 0 : i32
    return %arg0, %c0_i32 : i32, i32
  }
  func.func @transform_2(%arg0: i32, %arg1: memref<1xi32, #tpu.memory_space<smem>>) -> (i32, i32) {
    %c0_i32 = arith.constant 0 : i32
    %c0_i32_0 = arith.constant 0 : i32
    %c0_i32_1 = arith.constant 0 : i32
    return %c0_i32, %c0_i32_0 : i32, i32
  }
  func.func @transform_3(%arg0: i32, %arg1: memref<1xi32, #tpu.memory_space<smem>>) -> (i32, i32) {
    %c0_i32 = arith.constant 0 : i32
    %c0_i32_0 = arith.constant 0 : i32
    return %arg0, %c0_i32 : i32, i32
  }
}

</mosaic_0001>

<bundles_post_ra>
// kernel: tpu_custom_call.1
= control target key start
LH: loop header
LB: loop body
LE: loop exit
PB: predicated region body
PF: predicated region fallthrough
CT: control target
= control target key end

     0   :  { %10 = vsyncpa [#allocation5], 0  ;;  %s314_s0 = inlined_call_operand.<no memory space> [shape: s32[1], index: 0, kind: input, shape index: {}]   ;;  %s315_s1 = inlined_call_operand.vmem [shape: s32[16,1], index: 1, kind: input, shape index: {}]   ;;  %s316_s2 = inlined_call_operand.vmem [shape: s32[16,1], index: 2, kind: input, shape index: {}]   ;;  %s317_s3 = inlined_call_operand.hbm [shape: f32[128,128], index: 3, kind: input, shape index: {}]   ;;  %s318_s4 = inlined_call_operand.hbm [shape: f32[16,128], index: 4, kind: output, shape index: {}]  }
   0x1   :  { %11 = vsyncpa [#allocation6], 0  ;;  %s265_s15 = smov [#allocation4]  }
   0x2   :  { %s21_s16 = sshll.u32 %s265_s15, 4  ;;  %s22_s16 = int_to_ptr.vmem [resolvable:$true] %s21_s16 }
   0x3   :  { %s229_s17 = scalar_lea.vmem %s22_s16, 2048  ;;  %p234_p1 = scmp.lt.s32.totalorder %s22_s16, %s22_s16 }
   0x4   :  { %p230_p0 = scmp.ne.s32.totalorder %s22_s16, %s229_s17  ;;  %p235_p2 = scmp.lt.s32.totalorder %s229_s17, %s229_s17 }
   0x6   :  { %p236_p3 = por %p235_p2, %p234_p1 }
   0x8   :  { %p237_p4 = pnand %p236_p3, %p230_p0 }
   0xa   :  { %240 = shalt.err (!%p237_p4)
}
   0xb   :  { %s266_s0 = smov 128   ;;  %s267_s2 = smov 8  }
   0xc   :  { %27 = dma.hbm_to_vmem [thread:$0]  %s317_s3, 2048, %s22_s16, [#allocation5], %s266_s0, %s266_s0, %s267_s2  }
   0xd   :  { %261 = dma.done.wait [#allocation5], 2048  }
   0xe   :  { %262 = vsyncadd [#allocation5], 4294965248  ;;  %v268_v0 = vmov 0   ;;  %v31_v1 = vld [vmem:[%s315_s1] sm:$0xff]  ;;  %v62_v2 = vld [vmem:[#allocation4 + $0x78] sm:$0xff]  ;;  %v33_v19 = vlaneseq  ;;  %v269_v22 = vmov 1.0  }
   0xf   :  { %220 = vset.pattern.permute.xlu0 %v268_v0  ;;  %179 = vmatprep.subr.mxu0 %v62_v2  ;;  %v61_v3 = vld [vmem:[#allocation4 + $0x70] sm:$0xff]  ;;  %v32_v4 = vld [vmem:[%s315_s1 + $0x8] sm:$0xff]  ;;  %v59_v6 = vld [vmem:[#allocation4 + $0x60] sm:$0xff]  ;;  %s270_s1 = smov [#allocation7]  }
  0x10   :  { %36 = vperm.xlu0 %220, %v31_v1   ;;  %180 = vmatpush3.msra.mxu0 %v62_v2  ;;  %v60_v5 = vld [vmem:[#allocation4 + $0x68] sm:$0xff]  ;;  %v58_v7 = vld [vmem:[#allocation4 + $0x58] sm:$0xff]  ;;  %v57_v8 = vld [vmem:[#allocation4 + $0x50] sm:$0xff]  ;;  %v34_v20 = vand.u32 127, %v33_v19  ;;  %s145_s3 = sshll.u32 %s270_s1, 4  ;;  %s146_s3 = int_to_ptr.vmem [resolvable:$true] %s145_s3 }
  0x11   :  { %181 = vmatprep.subr.mxu0 %v61_v3  ;;  %v56_v9 = vld [vmem:[#allocation4 + $0x48] sm:$0xff]  ;;  %v55_v10 = vld [vmem:[#allocation4 + $0x40] sm:$0xff]  ;;  %v54_v11 = vld [vmem:[#allocation4 + $0x38] sm:$0xff]  ;;  %s241_s24 = scalar_lea.vmem %s146_s3, 256  ;;  %p246_p6 = scmp.lt.s32.totalorder %s146_s3, %s146_s3 }
  0x12   :  { %182 = vmatpush3.msra.mxu0 %v61_v3  ;;  %v53_v12 = vld [vmem:[#allocation4 + $0x30] sm:$0xff]  ;;  %v52_v13 = vld [vmem:[#allocation4 + $0x28] sm:$0xff]  ;;  %v51_v14 = vld [vmem:[#allocation4 + $0x20] sm:$0xff]  ;;  %p242_p5 = scmp.ne.s32.totalorder %s146_s3, %s241_s24  ;;  %p247_p7 = scmp.lt.s32.totalorder %s241_s24, %s241_s24 }
  0x13   :  { %183 = vmatprep.subr.mxu0 %v60_v5  ;;  %v50_v15 = vld [vmem:[#allocation4 + $0x18] sm:$0xff]  ;;  %v49_v16 = vld [vmem:[#allocation4 + $0x10] sm:$0xff]  ;;  %v48_v17 = vld [vmem:[#allocation4 + $0x8] sm:$0xff] }
  0x14   :  { %39 = vperm.xlu0 %220, %v32_v4   ;;  %184 = vmatpush3.msra.mxu0 %v60_v5  ;;  %v47_v18 = vld [vmem:[#allocation4] sm:$0xff]  ;;  %p248_p8 = por %p247_p7, %p246_p6 }
  0x15   :  { %185 = vmatprep.subr.mxu0 %v59_v6 }
  0x16   :  { %186 = vmatpush3.msra.mxu0 %v59_v6  ;;  %p249_p9 = pnand %p248_p8, %p242_p5 }
  0x17   :  { %187 = vmatprep.subr.mxu0 %v58_v7 }
  0x18   :  { %188 = vmatpush3.msra.mxu0 %v58_v7 }
  0x19   :  { %189 = vmatprep.subr.mxu0 %v57_v8 }
  0x1a   :  { %190 = vmatpush3.msra.mxu0 %v57_v8 }
  0x1b   :  { %191 = vmatprep.subr.mxu0 %v56_v9 }
  0x1c   :  { %192 = vmatpush3.msra.mxu0 %v56_v9 }
  0x1d   :  { %193 = vmatprep.subr.mxu0 %v55_v10 }
  0x1e   :  { %194 = vmatpush3.msra.mxu0 %v55_v10 }
  0x1f   :  { %195 = vmatprep.subr.mxu0 %v54_v11 }
  0x20   :  { %196 = vmatpush3.msra.mxu0 %v54_v11 }
  0x21   :  { %197 = vmatprep.subr.mxu0 %v53_v12 }
  0x22   :  { %198 = vmatpush3.msra.mxu0 %v53_v12 }
  0x23   :  { %199 = vmatprep.subr.mxu0 %v52_v13 }
  0x24   :  { %200 = vmatpush3.msra.mxu0 %v52_v13 }
  0x25   :  { %201 = vmatprep.subr.mxu0 %v51_v14 }
  0x26   :  { %202 = vmatpush3.msra.mxu0 %v51_v14 }
  0x27   :  { %203 = vmatprep.subr.mxu0 %v50_v15 }
  0x28   :  { %204 = vmatpush3.msra.mxu0 %v50_v15 }
  0x29   :  { %205 = vmatprep.subr.mxu0 %v49_v16 }
  0x2a   :  { %206 = vmatpush3.msra.mxu0 %v49_v16 }
  0x2b   :  { %207 = vmatprep.subr.mxu0 %v48_v17 }
  0x2c   :  { %208 = vmatpush3.msra.mxu0 %v48_v17 }
  0x2d   :  { %209 = vmatprep.subr.mxu0 %v47_v18 }
  0x2e   :  { %210 = vmatpush3.msra.mxu0 %v47_v18 }
  0x8b   :  { %v37_v21 = vpop.permute.xlu0 %36 }
  0x8c   :  { %vm41_vm0 = vcmp.eq.s32.totalorder %v37_v21, %v34_v20 }
  0x8d   :  { %211 = vmatprep.mubr.msk.f32.mxu0 %vm41_vm0, %v269_v22 }
  0x8f   :  { %v40_v23 = vpop.permute.xlu0 %39 }
  0x90   :  { %vm42_vm1 = vcmp.eq.s32.totalorder %v40_v23, %v34_v20 }
  0x91   :  { %212 = vmatmul.mubr.msk.f32.vlgmr.msra.gmra.mxu0 %vm42_vm1, %v269_v22 }
 0x151   :  { %v213_v24 = vpop.f32.mrf.mxu0 }
 0x152   :  { %139 = vst [vmem:[#allocation7 + $0x8] sm:$0xff] %v213_v24 }
 0x153   :  { %v129_v25 = vpop.f32.mrf.mxu0 }
 0x154   :  { %138 = vst [vmem:[#allocation7] sm:$0xff] %v129_v25 }
 0x155   :  { %252 = shalt.err (!%p249_p9)
}
 0x156   :  { %151 = dma.vmem_to_hbm [thread:$0]  %s146_s3, 256, %s318_s4, [#allocation6], %s266_s0, %s266_s0, %s267_s2  }
 0x157   :  { %263 = dma.done.wait [#allocation6], 256  }
 0x158   :  { %264 = vsyncadd [#allocation6], 4294967040 }
 0x159   :  { %155 = vsyncpa [#allocation5], 1 }
 0x15a   :  { %156 = vsyncpa [#allocation6], 1 }

</bundles_post_ra>
